<compile_context>
chip_gen: v7x
topology: tpu7x:2x2x1
jax: 0.10.0
libtpu: 0.0.40
codegen_flags: <defaults>
</compile_context>

<pallas_src>
import functools

import jax
import jax.numpy as jnp
from jax.experimental import pallas as pl
from jax.experimental.pallas import tpu as pltpu


# --------------------------------------------------------------------------
# Config (small, consistent with the module's shape algebra)
# --------------------------------------------------------------------------
BS = 2
SEQ = 8
HIDDEN = 32
NUM_HEADS = 4
NUM_EXPERTS = 4
TOPK = 2
INTERMEDIATE = 64

HEAD_DIM = HIDDEN // NUM_HEADS                    # 8
ROUNDED_DIM = HEAD_DIM * NUM_HEADS                # 32
INTER_H = INTERMEDIATE // NUM_HEADS               # 16
G = NUM_HEADS * NUM_EXPERTS                       # 16  router lanes per token
EIW = G * INTER_H                                 # 256 expert-up lanes per token
UPW = EIW + G                                     # 272 fused up-proj + router width
HIDDEN_PAD = ((HIDDEN + 127) // 128) * 128        # 128 lane-dense output slab

# Set to jnp.bfloat16 on v6e/v7x for MXU-native throughput (loosen the test
# tolerance accordingly).  Router/softmax/gate math always stays f32.
MXU_DTYPE = jnp.float32

# Token-tile rows per grid step.  8 at toy sizes so the grid actually
# pipelines (m=16 -> 2 tiles); use ~512 (v5e/v6e) / ~256 (v7x, 64 MiB VMEM)
# at realistic sizes per the HBM-roofline measurements.
TM = 8


def _gelu_tanh(x):
    # tanh-approximate GELU (EUP-friendly on TPU), computed in f32.
    c = 0.7978845608028654  # sqrt(2/pi)
    return 0.5 * x * (1.0 + jnp.tanh(c * (x + 0.044715 * x * x * x)))


# --------------------------------------------------------------------------
# Fused kernel: multi_head_layer + router + top-k + experts + merge_layer
# --------------------------------------------------------------------------
def _mhmoe_kernel(x_ref, wmh_ref, bmh_ref, wup_ref, bup_ref, eidx_ref,
                  gsum_ref, gexp_ref, wdn_ref, bdn_ref, wmg_ref, bmg_ref,
                  o_ref, *, num_experts, topk, eiw, mxu_dtype):
    f32 = jnp.float32

    # --- multi_head_layer: (tm, hidden) @ (hidden, H*Dh) --------------------
    h2d = jnp.dot(x_ref[...].astype(mxu_dtype), wmh_ref[...],
                  preferred_element_type=f32) + bmh_ref[...]

    # --- fused block-diag expert up-proj + router (one MXU pass) ------------
    up = jnp.dot(h2d.astype(mxu_dtype), wup_ref[...],
                 preferred_element_type=f32) + bup_ref[...]
    h_all = _gelu_tanh(up[:, :eiw])            # (tm, H*E*IH)  lane-dense (256)
    logits = up[:, eiw:]                       # (tm, H*E)     router logits

    # --- router: per-head (groups of E lanes) softmax, exact per-group ------
    # Subtracting the row-global max is a per-row constant, so each per-head
    # softmax is unchanged; exp/reciprocal run on the EUP.
    logits = logits - jnp.max(logits, axis=-1, keepdims=True)
    ex = jnp.exp(logits)
    denom = jnp.dot(ex, gsum_ref[...], preferred_element_type=f32)  # group sums
    wts = ex * pl.reciprocal(denom, approx=True)                    # softmax wts

    # --- top-k gate (rank within each head-group, lower index wins ties) ----
    eidx = eidx_ref[...]                       # (1, H*E) expert index per lane
    cnt = jnp.zeros_like(ex)
    for e in range(num_experts):
        # value of slot e broadcast to every lane of its head-group
        slot = jnp.dot(jnp.where(eidx == e, ex, 0.0), gsum_ref[...],
                       preferred_element_type=f32)
        cnt += jnp.where((slot > ex) | ((slot == ex) & (e < eidx)), 1.0, 0.0)
    gate = jnp.where(cnt < topk, wts, 0.0)     # (tm, H*E), f32

    # --- gated down-proj: ALL heads & experts combined in one matmul --------
    #   sum_e gate_e * (h_e @ W2_e)  ==  (gate_exp * h_all) @ W2_blockdiag
    gate_exp = jnp.dot(gate, gexp_ref[...], preferred_element_type=f32)
    z = (h_all * gate_exp).astype(mxu_dtype)
    y2d = jnp.dot(z, wdn_ref[...], preferred_element_type=f32)
    y2d = y2d + jnp.dot(gate, bdn_ref[...], preferred_element_type=f32)

    # --- merge_layer; output slab padded to 128 lanes (unmasked stores) -----
    out = jnp.dot(y2d.astype(mxu_dtype), wmg_ref[...],
                  preferred_element_type=f32) + bmg_ref[...]
    o_ref[...] = out.astype(o_ref.dtype)


# --------------------------------------------------------------------------
# Wrapper: weight re-layout (block-diagonal over heads) + pallas_call
# --------------------------------------------------------------------------
def mhmoe_forward(x, params, *, tm=TM, mxu_dtype=MXU_DTYPE):
    bs, seq, hidden = x.shape
    m = bs * seq
    m_pad = -(-m // tm) * tm
    x2d = x.reshape(m, hidden)
    if m_pad != m:
        x2d = jnp.pad(x2d, ((0, m_pad - m), (0, 0)))

    f32 = jnp.float32
    eye_h = jnp.eye(NUM_HEADS, dtype=f32)

    # Per-head concatenation of all expert weights.
    w1cat = jnp.transpose(params["w1"], (1, 0, 2)).reshape(HEAD_DIM,
                                                           NUM_EXPERTS * INTER_H)
    b1cat = params["b1"].reshape(1, NUM_EXPERTS * INTER_H)
    w2cat = params["w2"].reshape(NUM_EXPERTS * INTER_H, HEAD_DIM)
    b2stk = params["b2"].reshape(NUM_EXPERTS, HEAD_DIM)

    # Block-diagonal-over-heads weights: the kernel never splits/merges heads.
    wup = jnp.concatenate(
        [jnp.kron(eye_h, w1cat),                      # (H*Dh, H*E*IH)
         jnp.kron(eye_h, params["expert_emb"])],      # (H*Dh, H*E) router cols
        axis=1)                                       # (32, 272)
    bup = jnp.concatenate(
        [jnp.tile(b1cat, (1, NUM_HEADS)), jnp.zeros((1, G), f32)], axis=1)
    wdn = jnp.kron(eye_h, w2cat)                      # (256, 32)
    bdn = jnp.kron(eye_h, b2stk)                      # (16, 32)
    gsum = jnp.kron(eye_h, jnp.ones((NUM_EXPERTS, NUM_EXPERTS), f32))  # (16,16)
    gexp = jnp.kron(jnp.eye(G, dtype=f32), jnp.ones((1, INTER_H), f32))  # (16,256)
    eidx = jnp.tile(jnp.arange(NUM_EXPERTS, dtype=jnp.int32),
                    NUM_HEADS).reshape(1, G)

    # Lane-dense output: zero-pad merge weight columns to a multiple of 128.
    wmg = jnp.pad(params["w_merge"], ((0, 0), (0, HIDDEN_PAD - hidden)))
    bmg = jnp.pad(params["b_merge"].reshape(1, hidden),
                  ((0, 0), (0, HIDDEN_PAD - hidden)))

    # MXU-operand weights (optionally bf16); biases / router matrices stay f32.
    wmh = params["w_mh"].astype(mxu_dtype)
    wup = wup.astype(mxu_dtype)
    wdn = wdn.astype(mxu_dtype)
    wmg = wmg.astype(mxu_dtype)
    bmh = params["b_mh"].reshape(1, ROUNDED_DIM)

    kernel = functools.partial(_mhmoe_kernel, num_experts=NUM_EXPERTS,
                               topk=TOPK, eiw=EIW, mxu_dtype=mxu_dtype)

    def resident(shape):
        # Constant block index => weight DMA'd once, stays VMEM-resident.
        n = len(shape)
        return pl.BlockSpec(shape, lambda i, _n=n: (0,) * _n)

    num_tiles = m_pad // tm
    out = pl.pallas_call(
        kernel,
        out_shape=jax.ShapeDtypeStruct((m_pad, HIDDEN_PAD), x.dtype),
        grid=(num_tiles,),
        in_specs=[
            pl.BlockSpec((tm, hidden), lambda i: (i, 0)),   # x tile (pipelined)
            resident((hidden, ROUNDED_DIM)),                # w_mh
            resident((1, ROUNDED_DIM)),                     # b_mh
            resident((ROUNDED_DIM, UPW)),                   # fused up + router
            resident((1, UPW)),                             # b_up (router cols 0)
            resident((1, G)),                               # expert idx per lane
            resident((G, G)),                               # group-sum matrix
            resident((G, EIW)),                             # gate expansion
            resident((EIW, ROUNDED_DIM)),                   # block-diag down
            resident((G, ROUNDED_DIM)),                     # block-diag b2
            resident((ROUNDED_DIM, HIDDEN_PAD)),            # merge (padded)
            resident((1, HIDDEN_PAD)),                      # b_merge (padded)
        ],
        out_specs=pl.BlockSpec((tm, HIDDEN_PAD), lambda i: (i, 0)),
        compiler_params=pltpu.CompilerParams(
            dimension_semantics=("parallel",)),
    )(x2d, wmh, bmh, wup, bup, eidx, gsum, gexp, wdn, bdn, wmg, bmg)

    return out[:m, :hidden].reshape(bs, seq, hidden)


# --------------------------------------------------------------------------
# Pure-JAX reference mirroring the PyTorch forward (correctness check)
# --------------------------------------------------------------------------
def mhmoe_reference(x, params):
    bs, seq, _ = x.shape
    h = x.reshape(bs * seq, HIDDEN) @ params["w_mh"] + params["b_mh"]
    xh = h.reshape(bs * seq * NUM_HEADS, HEAD_DIM)
    logits = xh @ params["expert_emb"]
    rw = jax.nn.softmax(logits, axis=-1)
    topw, topi = jax.lax.top_k(rw, TOPK)
    outs = []
    for e in range(NUM_EXPERTS):
        hh = _gelu_tanh(xh @ params["w1"][e] + params["b1"][e][0])
        outs.append(hh @ params["w2"][e] + params["b2"][e][0])
    eo = jnp.stack(outs, axis=1)                               # (N, E, Dh)
    sel = jnp.take_along_axis(eo, topi[..., None], axis=1)     # (N, K, Dh)
    y = (sel * topw[..., None]).sum(axis=1)
    y = y.reshape(bs * seq, ROUNDED_DIM)
    out = y @ params["w_merge"] + params["b_merge"]
    return out.reshape(bs, seq, HIDDEN)


# --------------------------------------------------------------------------
def make_params(key):
    ks = jax.random.split(key, 10)
    s = 0.05
    return {
        "w_mh": jax.random.normal(ks[0], (HIDDEN, ROUNDED_DIM), jnp.float32) * s,
        "b_mh": jax.random.normal(ks[1], (ROUNDED_DIM,), jnp.float32) * s,
        "expert_emb": jax.random.normal(ks[2], (HEAD_DIM, NUM_EXPERTS), jnp.float32),
        "w1": jax.random.normal(ks[3], (NUM_EXPERTS, HEAD_DIM, INTER_H), jnp.float32) * s,
        "b1": jax.random.normal(ks[4], (NUM_EXPERTS, 1, INTER_H), jnp.float32) * s,
        "w2": jax.random.normal(ks[5], (NUM_EXPERTS, INTER_H, HEAD_DIM), jnp.float32) * s,
        "b2": jax.random.normal(ks[6], (NUM_EXPERTS, 1, HEAD_DIM), jnp.float32) * s,
        "w_merge": jax.random.normal(ks[7], (ROUNDED_DIM, HIDDEN), jnp.float32) * s,
        "b_merge": jax.random.normal(ks[8], (HIDDEN,), jnp.float32) * s,
    }


if __name__ == "__main__":
    key = jax.random.PRNGKey(0)
    kx, kp = jax.random.split(key)
    x = jax.random.normal(kx, (BS, SEQ, HIDDEN), jnp.float32)
    params = make_params(kp)

    fwd = jax.jit(mhmoe_forward)
    out = jax.block_until_ready(fwd(x, params))
    ref = jax.block_until_ready(mhmoe_reference(x, params))

    assert out.shape == (BS, SEQ, HIDDEN), out.shape
    # Tolerance accounts for pl.reciprocal(approx=True) in the softmax; router
    # selection itself is compared pre-division, so it matches the reference.
    assert jnp.allclose(out, ref, rtol=2e-3, atol=2e-4), (
        float(jnp.max(jnp.abs(out - ref))))
    print("KERNEL_OK")
</pallas_src>

<mosaic_0001>
module attributes {stable_mosaic.version = 11 : i64} {
  func.func @_mhmoe_kernel(%arg0: i32, %arg1: memref<8x32xf32, #tpu.memory_space<vmem>>, %arg2: memref<32x32xf32, #tpu.memory_space<vmem>>, %arg3: memref<1x32xf32, #tpu.memory_space<vmem>>, %arg4: memref<32x272xf32, #tpu.memory_space<vmem>>, %arg5: memref<1x272xf32, #tpu.memory_space<vmem>>, %arg6: memref<1x16xi32, #tpu.memory_space<vmem>>, %arg7: memref<16x16xf32, #tpu.memory_space<vmem>>, %arg8: memref<16x256xf32, #tpu.memory_space<vmem>>, %arg9: memref<256x32xf32, #tpu.memory_space<vmem>>, %arg10: memref<16x32xf32, #tpu.memory_space<vmem>>, %arg11: memref<32x128xf32, #tpu.memory_space<vmem>>, %arg12: memref<1x128xf32, #tpu.memory_space<vmem>>, %arg13: memref<8x128xf32, #tpu.memory_space<vmem>>) attributes {dimension_semantics = [#tpu.dimension_semantics<parallel>], iteration_bounds = array<i64: 2>, scalar_prefetch = 0 : i64, scratch_operands = 0 : i64, tpu.core_type = #tpu.core_type<tc>, window_params = [{transform_indices = @transform_0, window_bounds = array<i64: 8, 32>}, {pipeline_mode = #tpu.pipeline_mode<synchronous>, transform_indices = @transform_1, window_bounds = array<i64: 32, 32>}, {pipeline_mode = #tpu.pipeline_mode<synchronous>, transform_indices = @transform_2, window_bounds = array<i64: 1, 32>}, {pipeline_mode = #tpu.pipeline_mode<synchronous>, transform_indices = @transform_3, window_bounds = array<i64: 32, 272>}, {pipeline_mode = #tpu.pipeline_mode<synchronous>, transform_indices = @transform_4, window_bounds = array<i64: 1, 272>}, {pipeline_mode = #tpu.pipeline_mode<synchronous>, transform_indices = @transform_5, window_bounds = array<i64: 1, 16>}, {pipeline_mode = #tpu.pipeline_mode<synchronous>, transform_indices = @transform_6, window_bounds = array<i64: 16, 16>}, {pipeline_mode = #tpu.pipeline_mode<synchronous>, transform_indices = @transform_7, window_bounds = array<i64: 16, 256>}, {pipeline_mode = #tpu.pipeline_mode<synchronous>, transform_indices = @transform_8, window_bounds = array<i64: 256, 32>}, {pipeline_mode = #tpu.pipeline_mode<synchronous>, transform_indices = @transform_9, window_bounds = array<i64: 16, 32>}, {pipeline_mode = #tpu.pipeline_mode<synchronous>, transform_indices = @transform_10, window_bounds = array<i64: 32, 128>}, {pipeline_mode = #tpu.pipeline_mode<synchronous>, transform_indices = @transform_11, window_bounds = array<i64: 1, 128>}, {transform_indices = @transform_12, window_bounds = array<i64: 8, 128>}]} {
    %c0 = arith.constant 0 : index
    %c0_0 = arith.constant 0 : index
    %0 = vector.load %arg1[%c0, %c0_0] : memref<8x32xf32, #tpu.memory_space<vmem>>, vector<8x32xf32>
    %c0_1 = arith.constant 0 : index
    %c0_2 = arith.constant 0 : index
    %1 = vector.load %arg2[%c0_1, %c0_2] : memref<32x32xf32, #tpu.memory_space<vmem>>, vector<32x32xf32>
    %cst = arith.constant dense<0.000000e+00> : vector<8x32xf32>
    %2 = tpu.matmul %0, %1, %cst {dimension_numbers = #tpu.dot_dimension_numbers<[1], [0], [0], [1], [0, 0, 1, 1], [], []>} : vector<8x32xf32>, vector<32x32xf32>, vector<8x32xf32> -> vector<8x32xf32>
    %c0_3 = arith.constant 0 : index
    %c0_4 = arith.constant 0 : index
    %3 = vector.load %arg3[%c0_3, %c0_4] : memref<1x32xf32, #tpu.memory_space<vmem>>, vector<1x32xf32>
    %4 = vector.broadcast %3 : vector<1x32xf32> to vector<8x32xf32>
    %5 = arith.addf %2, %4 : vector<8x32xf32>
    %c0_5 = arith.constant 0 : index
    %c0_6 = arith.constant 0 : index
    %6 = vector.load %arg4[%c0_5, %c0_6] : memref<32x272xf32, #tpu.memory_space<vmem>>, vector<32x272xf32>
    %cst_7 = arith.constant dense<0.000000e+00> : vector<8x272xf32>
    %7 = tpu.matmul %5, %6, %cst_7 {dimension_numbers = #tpu.dot_dimension_numbers<[1], [0], [0], [1], [0, 0, 1, 1], [], []>} : vector<8x32xf32>, vector<32x272xf32>, vector<8x272xf32> -> vector<8x272xf32>
    %c0_8 = arith.constant 0 : index
    %c0_9 = arith.constant 0 : index
    %8 = vector.load %arg5[%c0_8, %c0_9] : memref<1x272xf32, #tpu.memory_space<vmem>>, vector<1x272xf32>
    %9 = vector.broadcast %8 : vector<1x272xf32> to vector<8x272xf32>
    %10 = arith.addf %7, %9 : vector<8x272xf32>
    %11 = vector.extract_strided_slice %10 {offsets = [0, 0], sizes = [8, 256], strides = [1, 1]} : vector<8x272xf32> to vector<8x256xf32>
    %cst_10 = arith.constant 5.000000e-01 : f32
    %12 = vector.broadcast %cst_10 : f32 to vector<8x256xf32>
    %13 = arith.mulf %12, %11 : vector<8x256xf32>
    %cst_11 = arith.constant 4.471500e-02 : f32
    %14 = vector.broadcast %cst_11 : f32 to vector<8x256xf32>
    %15 = arith.mulf %14, %11 : vector<8x256xf32>
    %16 = arith.mulf %15, %11 : vector<8x256xf32>
    %17 = arith.mulf %16, %11 : vector<8x256xf32>
    %18 = arith.addf %11, %17 : vector<8x256xf32>
    %cst_12 = arith.constant 0.797884583 : f32
    %19 = vector.broadcast %cst_12 : f32 to vector<8x256xf32>
    %20 = arith.mulf %19, %18 : vector<8x256xf32>
    %21 = math.tanh %20 : vector<8x256xf32>
    %cst_13 = arith.constant 1.000000e+00 : f32
    %22 = vector.broadcast %cst_13 : f32 to vector<8x256xf32>
    %23 = arith.addf %22, %21 : vector<8x256xf32>
    %24 = arith.mulf %13, %23 : vector<8x256xf32>
    %25 = vector.extract_strided_slice %10 {offsets = [0, 256], sizes = [8, 16], strides = [1, 1]} : vector<8x272xf32> to vector<8x16xf32>
    %cst_14 = arith.constant dense<0xFF800000> : vector<8xf32>
    %26 = vector.multi_reduction <maximumf>, %25, %cst_14 [1] : vector<8x16xf32> to vector<8xf32>
    %27 = vector.shape_cast %26 : vector<8xf32> to vector<8x1xf32>
    %28 = vector.broadcast %27 : vector<8x1xf32> to vector<8x16xf32>
    %29 = arith.subf %25, %28 : vector<8x16xf32>
    %30 = math.exp %29 : vector<8x16xf32>
    %c0_15 = arith.constant 0 : index
    %c0_16 = arith.constant 0 : index
    %31 = vector.load %arg7[%c0_15, %c0_16] : memref<16x16xf32, #tpu.memory_space<vmem>>, vector<16x16xf32>
    %cst_17 = arith.constant dense<0.000000e+00> : vector<8x16xf32>
    %32 = tpu.matmul %30, %31, %cst_17 {dimension_numbers = #tpu.dot_dimension_numbers<[1], [0], [0], [1], [0, 0, 1, 1], [], []>} : vector<8x16xf32>, vector<16x16xf32>, vector<8x16xf32> -> vector<8x16xf32>
    %33 = tpu.reciprocal %32 {approx = true} : vector<8x16xf32> -> vector<8x16xf32>
    %34 = arith.mulf %30, %33 : vector<8x16xf32>
    %c0_18 = arith.constant 0 : index
    %c0_19 = arith.constant 0 : index
    %35 = vector.load %arg6[%c0_18, %c0_19] : memref<1x16xi32, #tpu.memory_space<vmem>>, vector<1x16xi32>
    %cst_20 = arith.constant 0.000000e+00 : f32
    %36 = vector.broadcast %cst_20 : f32 to vector<8x16xf32>
    %c0_i32 = arith.constant 0 : i32
    %37 = vector.broadcast %c0_i32 : i32 to vector<1x16xi32>
    %38 = arith.cmpi eq, %35, %37 : vector<1x16xi32>
    %cst_21 = arith.constant 0.000000e+00 : f32
    %39 = vector.shape_cast %38 : vector<1x16xi1> to vector<1x16xi1>
    %40 = vector.broadcast %39 : vector<1x16xi1> to vector<8x16xi1>
    %41 = vector.broadcast %cst_21 : f32 to vector<8x16xf32>
    %42 = arith.select %40, %30, %41 : vector<8x16xi1>, vector<8x16xf32>
    %c0_22 = arith.constant 0 : index
    %c0_23 = arith.constant 0 : index
    %43 = vector.load %arg7[%c0_22, %c0_23] : memref<16x16xf32, #tpu.memory_space<vmem>>, vector<16x16xf32>
    %cst_24 = arith.constant dense<0.000000e+00> : vector<8x16xf32>
    %44 = tpu.matmul %42, %43, %cst_24 {dimension_numbers = #tpu.dot_dimension_numbers<[1], [0], [0], [1], [0, 0, 1, 1], [], []>} : vector<8x16xf32>, vector<16x16xf32>, vector<8x16xf32> -> vector<8x16xf32>
    %45 = arith.cmpf ogt, %44, %30 : vector<8x16xf32>
    %46 = arith.cmpf oeq, %44, %30 : vector<8x16xf32>
    %c0_i32_25 = arith.constant 0 : i32
    %47 = vector.broadcast %c0_i32_25 : i32 to vector<1x16xi32>
    %48 = arith.cmpi sgt, %35, %47 : vector<1x16xi32>
    %49 = vector.broadcast %48 : vector<1x16xi1> to vector<8x16xi1>
    %50 = arith.andi %46, %49 : vector<8x16xi1>
    %51 = arith.ori %45, %50 : vector<8x16xi1>
    %cst_26 = arith.constant 1.000000e+00 : f32
    %cst_27 = arith.constant 0.000000e+00 : f32
    %52 = vector.broadcast %cst_26 : f32 to vector<8x16xf32>
    %53 = vector.broadcast %cst_27 : f32 to vector<8x16xf32>
    %54 = arith.select %51, %52, %53 : vector<8x16xi1>, vector<8x16xf32>
    %55 = arith.addf %36, %54 : vector<8x16xf32>
    %c1_i32 = arith.constant 1 : i32
    %56 = vector.broadcast %c1_i32 : i32 to vector<1x16xi32>
    %57 = arith.cmpi eq, %35, %56 : vector<1x16xi32>
    %cst_28 = arith.constant 0.000000e+00 : f32
    %58 = vector.shape_cast %57 : vector<1x16xi1> to vector<1x16xi1>
    %59 = vector.broadcast %58 : vector<1x16xi1> to vector<8x16xi1>
    %60 = vector.broadcast %cst_28 : f32 to vector<8x16xf32>
    %61 = arith.select %59, %30, %60 : vector<8x16xi1>, vector<8x16xf32>
    %c0_29 = arith.constant 0 : index
    %c0_30 = arith.constant 0 : index
    %62 = vector.load %arg7[%c0_29, %c0_30] : memref<16x16xf32, #tpu.memory_space<vmem>>, vector<16x16xf32>
    %cst_31 = arith.constant dense<0.000000e+00> : vector<8x16xf32>
    %63 = tpu.matmul %61, %62, %cst_31 {dimension_numbers = #tpu.dot_dimension_numbers<[1], [0], [0], [1], [0, 0, 1, 1], [], []>} : vector<8x16xf32>, vector<16x16xf32>, vector<8x16xf32> -> vector<8x16xf32>
    %64 = arith.cmpf ogt, %63, %30 : vector<8x16xf32>
    %65 = arith.cmpf oeq, %63, %30 : vector<8x16xf32>
    %c1_i32_32 = arith.constant 1 : i32
    %66 = vector.broadcast %c1_i32_32 : i32 to vector<1x16xi32>
    %67 = arith.cmpi sgt, %35, %66 : vector<1x16xi32>
    %68 = vector.broadcast %67 : vector<1x16xi1> to vector<8x16xi1>
    %69 = arith.andi %65, %68 : vector<8x16xi1>
    %70 = arith.ori %64, %69 : vector<8x16xi1>
    %cst_33 = arith.constant 1.000000e+00 : f32
    %cst_34 = arith.constant 0.000000e+00 : f32
    %71 = vector.broadcast %cst_33 : f32 to vector<8x16xf32>
    %72 = vector.broadcast %cst_34 : f32 to vector<8x16xf32>
    %73 = arith.select %70, %71, %72 : vector<8x16xi1>, vector<8x16xf32>
    %74 = arith.addf %55, %73 : vector<8x16xf32>
    %c2_i32 = arith.constant 2 : i32
    %75 = vector.broadcast %c2_i32 : i32 to vector<1x16xi32>
    %76 = arith.cmpi eq, %35, %75 : vector<1x16xi32>
    %cst_35 = arith.constant 0.000000e+00 : f32
    %77 = vector.shape_cast %76 : vector<1x16xi1> to vector<1x16xi1>
    %78 = vector.broadcast %77 : vector<1x16xi1> to vector<8x16xi1>
    %79 = vector.broadcast %cst_35 : f32 to vector<8x16xf32>
    %80 = arith.select %78, %30, %79 : vector<8x16xi1>, vector<8x16xf32>
    %c0_36 = arith.constant 0 : index
    %c0_37 = arith.constant 0 : index
    %81 = vector.load %arg7[%c0_36, %c0_37] : memref<16x16xf32, #tpu.memory_space<vmem>>, vector<16x16xf32>
    %cst_38 = arith.constant dense<0.000000e+00> : vector<8x16xf32>
    %82 = tpu.matmul %80, %81, %cst_38 {dimension_numbers = #tpu.dot_dimension_numbers<[1], [0], [0], [1], [0, 0, 1, 1], [], []>} : vector<8x16xf32>, vector<16x16xf32>, vector<8x16xf32> -> vector<8x16xf32>
    %83 = arith.cmpf ogt, %82, %30 : vector<8x16xf32>
    %84 = arith.cmpf oeq, %82, %30 : vector<8x16xf32>
    %c2_i32_39 = arith.constant 2 : i32
    %85 = vector.broadcast %c2_i32_39 : i32 to vector<1x16xi32>
    %86 = arith.cmpi sgt, %35, %85 : vector<1x16xi32>
    %87 = vector.broadcast %86 : vector<1x16xi1> to vector<8x16xi1>
    %88 = arith.andi %84, %87 : vector<8x16xi1>
    %89 = arith.ori %83, %88 : vector<8x16xi1>
    %cst_40 = arith.constant 1.000000e+00 : f32
    %cst_41 = arith.constant 0.000000e+00 : f32
    %90 = vector.broadcast %cst_40 : f32 to vector<8x16xf32>
    %91 = vector.broadcast %cst_41 : f32 to vector<8x16xf32>
    %92 = arith.select %89, %90, %91 : vector<8x16xi1>, vector<8x16xf32>
    %93 = arith.addf %74, %92 : vector<8x16xf32>
    %c3_i32 = arith.constant 3 : i32
    %94 = vector.broadcast %c3_i32 : i32 to vector<1x16xi32>
    %95 = arith.cmpi eq, %35, %94 : vector<1x16xi32>
    %cst_42 = arith.constant 0.000000e+00 : f32
    %96 = vector.shape_cast %95 : vector<1x16xi1> to vector<1x16xi1>
    %97 = vector.broadcast %96 : vector<1x16xi1> to vector<8x16xi1>
    %98 = vector.broadcast %cst_42 : f32 to vector<8x16xf32>
    %99 = arith.select %97, %30, %98 : vector<8x16xi1>, vector<8x16xf32>
    %c0_43 = arith.constant 0 : index
    %c0_44 = arith.constant 0 : index
    %100 = vector.load %arg7[%c0_43, %c0_44] : memref<16x16xf32, #tpu.memory_space<vmem>>, vector<16x16xf32>
    %cst_45 = arith.constant dense<0.000000e+00> : vector<8x16xf32>
    %101 = tpu.matmul %99, %100, %cst_45 {dimension_numbers = #tpu.dot_dimension_numbers<[1], [0], [0], [1], [0, 0, 1, 1], [], []>} : vector<8x16xf32>, vector<16x16xf32>, vector<8x16xf32> -> vector<8x16xf32>
    %102 = arith.cmpf ogt, %101, %30 : vector<8x16xf32>
    %103 = arith.cmpf oeq, %101, %30 : vector<8x16xf32>
    %c3_i32_46 = arith.constant 3 : i32
    %104 = vector.broadcast %c3_i32_46 : i32 to vector<1x16xi32>
    %105 = arith.cmpi sgt, %35, %104 : vector<1x16xi32>
    %106 = vector.broadcast %105 : vector<1x16xi1> to vector<8x16xi1>
    %107 = arith.andi %103, %106 : vector<8x16xi1>
    %108 = arith.ori %102, %107 : vector<8x16xi1>
    %cst_47 = arith.constant 1.000000e+00 : f32
    %cst_48 = arith.constant 0.000000e+00 : f32
    %109 = vector.broadcast %cst_47 : f32 to vector<8x16xf32>
    %110 = vector.broadcast %cst_48 : f32 to vector<8x16xf32>
    %111 = arith.select %108, %109, %110 : vector<8x16xi1>, vector<8x16xf32>
    %112 = arith.addf %93, %111 : vector<8x16xf32>
    %cst_49 = arith.constant 2.000000e+00 : f32
    %113 = vector.broadcast %cst_49 : f32 to vector<8x16xf32>
    %114 = arith.cmpf olt, %112, %113 : vector<8x16xf32>
    %cst_50 = arith.constant 0.000000e+00 : f32
    %115 = vector.broadcast %cst_50 : f32 to vector<8x16xf32>
    %116 = arith.select %114, %34, %115 : vector<8x16xi1>, vector<8x16xf32>
    %c0_51 = arith.constant 0 : index
    %c0_52 = arith.constant 0 : index
    %117 = vector.load %arg8[%c0_51, %c0_52] : memref<16x256xf32, #tpu.memory_space<vmem>>, vector<16x256xf32>
    %cst_53 = arith.constant dense<0.000000e+00> : vector<8x256xf32>
    %118 = tpu.matmul %116, %117, %cst_53 {dimension_numbers = #tpu.dot_dimension_numbers<[1], [0], [0], [1], [0, 0, 1, 1], [], []>} : vector<8x16xf32>, vector<16x256xf32>, vector<8x256xf32> -> vector<8x256xf32>
    %119 = arith.mulf %24, %118 : vector<8x256xf32>
    %c0_54 = arith.constant 0 : index
    %c0_55 = arith.constant 0 : index
    %120 = vector.load %arg9[%c0_54, %c0_55] : memref<256x32xf32, #tpu.memory_space<vmem>>, vector<256x32xf32>
    %cst_56 = arith.constant dense<0.000000e+00> : vector<8x32xf32>
    %121 = tpu.matmul %119, %120, %cst_56 {dimension_numbers = #tpu.dot_dimension_numbers<[1], [0], [0], [1], [0, 0, 1, 1], [], []>} : vector<8x256xf32>, vector<256x32xf32>, vector<8x32xf32> -> vector<8x32xf32>
    %c0_57 = arith.constant 0 : index
    %c0_58 = arith.constant 0 : index
    %122 = vector.load %arg10[%c0_57, %c0_58] : memref<16x32xf32, #tpu.memory_space<vmem>>, vector<16x32xf32>
    %cst_59 = arith.constant dense<0.000000e+00> : vector<8x32xf32>
    %123 = tpu.matmul %116, %122, %cst_59 {dimension_numbers = #tpu.dot_dimension_numbers<[1], [0], [0], [1], [0, 0, 1, 1], [], []>} : vector<8x16xf32>, vector<16x32xf32>, vector<8x32xf32> -> vector<8x32xf32>
    %124 = arith.addf %121, %123 : vector<8x32xf32>
    %c0_60 = arith.constant 0 : index
    %c0_61 = arith.constant 0 : index
    %125 = vector.load %arg11[%c0_60, %c0_61] : memref<32x128xf32, #tpu.memory_space<vmem>>, vector<32x128xf32>
    %cst_62 = arith.constant dense<0.000000e+00> : vector<8x128xf32>
    %126 = tpu.matmul %124, %125, %cst_62 {dimension_numbers = #tpu.dot_dimension_numbers<[1], [0], [0], [1], [0, 0, 1, 1], [], []>} : vector<8x32xf32>, vector<32x128xf32>, vector<8x128xf32> -> vector<8x128xf32>
    %c0_63 = arith.constant 0 : index
    %c0_64 = arith.constant 0 : index
    %127 = vector.load %arg12[%c0_63, %c0_64] : memref<1x128xf32, #tpu.memory_space<vmem>>, vector<1x128xf32>
    %128 = vector.broadcast %127 : vector<1x128xf32> to vector<8x128xf32>
    %129 = arith.addf %126, %128 : vector<8x128xf32>
    %c0_65 = arith.constant 0 : index
    %c0_66 = arith.constant 0 : index
    %130 = vector.load %arg13[%c0_65, %c0_66] : memref<8x128xf32, #tpu.memory_space<vmem>>, vector<8x128xf32>
    tpu.vector_store %arg13[%c0_65, %c0_66], %129 {strides = array<i32>} : memref<8x128xf32, #tpu.memory_space<vmem>>, vector<8x128xf32>,
    return
  }
  func.func @transform_0(%arg0: i32) -> (i32, i32) {
    %c0_i32 = arith.constant 0 : i32
    %c0_i32_0 = arith.constant 0 : i32
    return %arg0, %c0_i32 : i32, i32
  }
  func.func @transform_1(%arg0: i32) -> (i32, i32) {
    %c0_i32 = arith.constant 0 : i32
    %c0_i32_0 = arith.constant 0 : i32
    %c0_i32_1 = arith.constant 0 : i32
    return %c0_i32, %c0_i32_0 : i32, i32
  }
  func.func @transform_2(%arg0: i32) -> (i32, i32) {
    %c0_i32 = arith.constant 0 : i32
    %c0_i32_0 = arith.constant 0 : i32
    %c0_i32_1 = arith.constant 0 : i32
    return %c0_i32, %c0_i32_0 : i32, i32
  }
  func.func @transform_3(%arg0: i32) -> (i32, i32) {
    %c0_i32 = arith.constant 0 : i32
    %c0_i32_0 = arith.constant 0 : i32
    %c0_i32_1 = arith.constant 0 : i32
    return %c0_i32, %c0_i32_0 : i32, i32
  }
  func.func @transform_4(%arg0: i32) -> (i32, i32) {
    %c0_i32 = arith.constant 0 : i32
    %c0_i32_0 = arith.constant 0 : i32
    %c0_i32_1 = arith.constant 0 : i32
    return %c0_i32, %c0_i32_0 : i32, i32
  }
  func.func @transform_5(%arg0: i32) -> (i32, i32) {
    %c0_i32 = arith.constant 0 : i32
    %c0_i32_0 = arith.constant 0 : i32
    %c0_i32_1 = arith.constant 0 : i32
    return %c0_i32, %c0_i32_0 : i32, i32
  }
  func.func @transform_6(%arg0: i32) -> (i32, i32) {
    %c0_i32 = arith.constant 0 : i32
    %c0_i32_0 = arith.constant 0 : i32
    %c0_i32_1 = arith.constant 0 : i32
    return %c0_i32, %c0_i32_0 : i32, i32
  }
  func.func @transform_7(%arg0: i32) -> (i32, i32) {
    %c0_i32 = arith.constant 0 : i32
    %c0_i32_0 = arith.constant 0 : i32
    %c0_i32_1 = arith.constant 0 : i32
    return %c0_i32, %c0_i32_0 : i32, i32
  }
  func.func @transform_8(%arg0: i32) -> (i32, i32) {
    %c0_i32 = arith.constant 0 : i32
    %c0_i32_0 = arith.constant 0 : i32
    %c0_i32_1 = arith.constant 0 : i32
    return %c0_i32, %c0_i32_0 : i32, i32
  }
  func.func @transform_9(%arg0: i32) -> (i32, i32) {
    %c0_i32 = arith.constant 0 : i32
    %c0_i32_0 = arith.constant 0 : i32
    %c0_i32_1 = arith.constant 0 : i32
    return %c0_i32, %c0_i32_0 : i32, i32
  }
  func.func @transform_10(%arg0: i32) -> (i32, i32) {
    %c0_i32 = arith.constant 0 : i32
    %c0_i32_0 = arith.constant 0 : i32
    %c0_i32_1 = arith.constant 0 : i32
    return %c0_i32, %c0_i32_0 : i32, i32
  }
  func.func @transform_11(%arg0: i32) -> (i32, i32) {
    %c0_i32 = arith.constant 0 : i32
    %c0_i32_0 = arith.constant 0 : i32
    %c0_i32_1 = arith.constant 0 : i32
    return %c0_i32, %c0_i32_0 : i32, i32
  }
  func.func @transform_12(%arg0: i32) -> (i32, i32) {
    %c0_i32 = arith.constant 0 : i32
    %c0_i32_0 = arith.constant 0 : i32
    return %arg0, %c0_i32 : i32, i32
  }
}

</mosaic_0001>

<bundles_post_ra>
// kernel: mul.4
= control target key start
LH: loop header
LB: loop body
LE: loop exit
PB: predicated region body
PF: predicated region fallthrough
CT: control target
= control target key end

     0   :  { %vm42_vm0 = vcmask 1047556   ;;  %vm44_vm1 = vcmask 130048   ;;  %s93_s22 = smov 16   ;;  %s94_s25 = smov 32   ;;  %vm54_vm2 = vcmask 523648   ;;  %vm64_vm3 = vcmask 392448   ;;  %s146_s0 = inlined_call_operand.vmem [shape: f32[8,4,16], index: 0, kind: input, shape index: {}]   ;;  %s147_s1 = inlined_call_operand.vmem [shape: f32[8,64], index: 1, kind: output, shape index: {}]  }
   0x1   :  { %v82_v0 = vld [vmem:[%s146_s0 + $0x1c] sm:$0xf]  ;;  %v83_v1 = vld [vmem:[%s146_s0 + $0x18] sm:$0xf]  ;;  %v84_v2 = vld [vmem:[%s146_s0 + $0x14] sm:$0xf] }
   0x2   :  { %8 = vst [vmem:[#allocation0 + $0x38] sm:$0xf] %v82_v0  ;;  %13 = vst [vmem:[#allocation0 + $0x30] sm:$0xf] %v83_v1  ;;  %v85_v3 = vld [vmem:[%s146_s0 + $0x10] sm:$0xf] }
   0x3   :  { %18 = vst [vmem:[#allocation0 + $0x28] sm:$0xf] %v84_v2  ;;  %v86_v4 = vld [vmem:[%s146_s0 + $0xc] sm:$0xf]  ;;  %v87_v5 = vld [vmem:[%s146_s0 + $0x8] sm:$0xf] }
   0x4   :  { %23 = vst [vmem:[#allocation0 + $0x20] sm:$0xf] %v85_v3  ;;  %28 = vst [vmem:[#allocation0 + $0x18] sm:$0xf] %v86_v4  ;;  %v88_v6 = vld [vmem:[%s146_s0 + $0x4] sm:$0xf] }
   0x5   :  { %33 = vst [vmem:[#allocation0 + $0x10] sm:$0xf] %v87_v5  ;;  %v38_v7 = vld [vmem:[%s146_s0] sm:$0xf]  ;;  %37 = vst [vmem:[#allocation0 + $0x8] sm:$0xf] %v88_v6 }
   0x6   :  { %39 = vst [vmem:[#allocation0] sm:$0xf] %v38_v7  ;;  %s92_s0 = smov 48   ;;  %vm74_vm4 = vcmask 261248  }
   0xb   :  { %v49_v8 = vld [vmem:[#allocation0 + $0x3] ss:$8 sm:$0xf0]   ;;  %v59_v9 = vld [vmem:[#allocation0 + $0x2] ss:$8 sm:$0xf0]  }
   0xc   :  { %v69_v14 = vld [vmem:[#allocation0 + $0x1] ss:$8 sm:$0xf0]   ;;  %v41_v17 = vld [vmem:[#allocation0] ss:$8 sm:$0xf0]  }
   0xd   :  { %v47_v10 = vld [vmem:[#allocation0 + $0x3] ss:$8 sm:$0xf]   ;;  %v57_v11 = vld [vmem:[#allocation0 + $0x2] ss:$8 sm:$0xf]  }
   0xe   :  { %v51_v12 = vsel %vm42_vm0, %v49_v8, %v47_v10  ;;  %v67_v13 = vld [vmem:[#allocation0 + $0x1] ss:$8 sm:$0xf]   ;;  %v40_v16 = vld [vmem:[#allocation0] ss:$8 sm:$0xf]   ;;  %v61_v18 = vsel %vm42_vm0, %v59_v9, %v57_v11 }
   0xf   :  { %52 = vrot.lane.b32.xlu0 %v51_v12, %s92_s0  ;;  %v71_v15 = vsel %vm42_vm0, %v69_v14, %v67_v13  ;;  %v43_v19 = vsel %vm42_vm0, %v41_v17, %v40_v16 }
  0x10   :  { %72 = vrot.lane.b32.xlu1 %v71_v15, %s93_s22  ;;  %45 = vst.msk [vmem:[%s147_s1] sm:$0xff] %vm44_vm1, %v43_v19  }
  0x13   :  { %62 = vrot.lane.b32.xlu0 %v61_v18, %s94_s25 }
  0x81   :  { %v53_v20 = vpop.permute.xlu0 %52  }
  0x82   :  { %55 = vst.msk [vmem:[%s147_s1] sm:$0xff] %vm54_vm2, %v53_v20   ;;  %v73_v21 = vpop.permute.xlu1 %72  }
  0x85   :  { %v63_v22 = vpop.permute.xlu0 %62  }
  0x86   :  { %65 = vst.msk [vmem:[%s147_s1] sm:$0xff] %vm64_vm3, %v63_v22  }
  0x87   :  { %75 = vst.msk [vmem:[%s147_s1] sm:$0xff] %vm74_vm4, %v73_v21  }

// kernel: tile.17
= control target key start
LH: loop header
LB: loop body
LE: loop exit
PB: predicated region body
PF: predicated region fallthrough
CT: control target
= control target key end

     0   :  { %vm7_vm0 = vcmask 31744   ;;  %s37_s8 = smov 4   ;;  %s38_s9 = smov 8   ;;  %vm13_vm1 = vcmask 130144   ;;  %vm19_vm2 = vcmask 97344   ;;  %vm25_vm3 = vcmask 64544   ;;  %s55_s0 = inlined_call_operand.vmem [shape: s32[4,4], index: 0, kind: input, shape index: {}]   ;;  %s56_s1 = inlined_call_operand.vmem [shape: s32[1,16], index: 1, kind: output, shape index: {}]  }
   0x1   :  { %v4_v0 = vld [vmem:[%s55_s0] sm:$0xf]  ;;  %s36_s0 = smov 12  }
   0x2   :  { %5 = vst [vmem:[#allocation1] sm:$0xf] %v4_v0 }
   0x9   :  { %v10_v1 = vld [vmem:[#allocation1 + $0x3] sm:$0x1]   ;;  %v22_v2 = vld [vmem:[#allocation1 + $0x1] sm:$0x1]   ;;  %v6_v3 = vld [vmem:[#allocation1] sm:$0x1]  }
   0xa   :  { %11 = vrot.lane.b32.xlu0 %v10_v1, %s36_s0  ;;  %23 = vrot.lane.b32.xlu1 %v22_v2, %s37_s8  ;;  %v16_v4 = vld [vmem:[#allocation1 + $0x2] sm:$0x1]   ;;  %8 = vst.msk [vmem:[#allocation0] sm:$0x1] %vm7_vm0, %v6_v3  }
   0xe   :  { %17 = vrot.lane.b32.xlu0 %v16_v4, %s38_s9 }
  0x7c   :  { %v12_v5 = vpop.permute.xlu0 %11   ;;  %v24_v6 = vpop.permute.xlu1 %23  }
  0x7d   :  { %14 = vst.msk [vmem:[#allocation0] sm:$0x1] %vm13_vm1, %v12_v5  }
  0x80   :  { %v18_v7 = vpop.permute.xlu0 %17  }
  0x81   :  { %20 = vst.msk [vmem:[#allocation0] sm:$0x1] %vm19_vm2, %v18_v7  }
  0x82   :  { %26 = vst.msk [vmem:[#allocation0] sm:$0x1] %vm25_vm3, %v24_v6  }
  0x89   :  { %v30_v8 = vld [vmem:[#allocation0] sm:$0x1] }
  0x8a   :  { %32 = vst [vmem:[%s56_s1] sm:$0x1] %v30_v8 }

// kernel: mul.60
= control target key start
LH: loop header
LB: loop body
LE: loop exit
PB: predicated region body
PF: predicated region fallthrough
CT: control target
= control target key end

     0   :  { %vm42_vm0 = vcmask 1047556   ;;  %vm44_vm1 = vcmask 130048   ;;  %s93_s22 = smov 16   ;;  %s94_s25 = smov 32   ;;  %vm54_vm2 = vcmask 523648   ;;  %vm64_vm3 = vcmask 392448   ;;  %s146_s0 = inlined_call_operand.vmem [shape: f32[4,16,8], index: 0, kind: input, shape index: {}]   ;;  %s147_s1 = inlined_call_operand.vmem [shape: f32[64,8], index: 1, kind: output, shape index: {}]  }
   0x1   :  { %v82_v0 = vld [vmem:[%s146_s0 + $0x1c] sm:$0xf]  ;;  %v83_v1 = vld [vmem:[%s146_s0 + $0x18] sm:$0xf]  ;;  %v84_v2 = vld [vmem:[%s146_s0 + $0x14] sm:$0xf] }
   0x2   :  { %8 = vst [vmem:[#allocation0 + $0x38] sm:$0xf] %v82_v0  ;;  %13 = vst [vmem:[#allocation0 + $0x30] sm:$0xf] %v83_v1  ;;  %v85_v3 = vld [vmem:[%s146_s0 + $0x10] sm:$0xf] }
   0x3   :  { %18 = vst [vmem:[#allocation0 + $0x28] sm:$0xf] %v84_v2  ;;  %v86_v4 = vld [vmem:[%s146_s0 + $0xc] sm:$0xf]  ;;  %v87_v5 = vld [vmem:[%s146_s0 + $0x8] sm:$0xf] }
   0x4   :  { %23 = vst [vmem:[#allocation0 + $0x20] sm:$0xf] %v85_v3  ;;  %28 = vst [vmem:[#allocation0 + $0x18] sm:$0xf] %v86_v4  ;;  %v88_v6 = vld [vmem:[%s146_s0 + $0x4] sm:$0xf] }
   0x5   :  { %33 = vst [vmem:[#allocation0 + $0x10] sm:$0xf] %v87_v5  ;;  %v38_v7 = vld [vmem:[%s146_s0] sm:$0xf]  ;;  %37 = vst [vmem:[#allocation0 + $0x8] sm:$0xf] %v88_v6 }
   0x6   :  { %39 = vst [vmem:[#allocation0] sm:$0xf] %v38_v7  ;;  %s92_s0 = smov 48   ;;  %vm74_vm4 = vcmask 261248  }
   0xb   :  { %v49_v8 = vld [vmem:[#allocation0 + $0x3] ss:$8 sm:$0xf0]   ;;  %v59_v9 = vld [vmem:[#allocation0 + $0x2] ss:$8 sm:$0xf0]  }
   0xc   :  { %v69_v14 = vld [vmem:[#allocation0 + $0x1] ss:$8 sm:$0xf0]   ;;  %v41_v17 = vld [vmem:[#allocation0] ss:$8 sm:$0xf0]  }
   0xd   :  { %v47_v10 = vld [vmem:[#allocation0 + $0x3] ss:$8 sm:$0xf]   ;;  %v57_v11 = vld [vmem:[#allocation0 + $0x2] ss:$8 sm:$0xf]  }
   0xe   :  { %v51_v12 = vsel %vm42_vm0, %v49_v8, %v47_v10  ;;  %v67_v13 = vld [vmem:[#allocation0 + $0x1] ss:$8 sm:$0xf]   ;;  %v40_v16 = vld [vmem:[#allocation0] ss:$8 sm:$0xf]   ;;  %v61_v18 = vsel %vm42_vm0, %v59_v9, %v57_v11 }
   0xf   :  { %52 = vrot.lane.b32.xlu0 %v51_v12, %s92_s0  ;;  %v71_v15 = vsel %vm42_vm0, %v69_v14, %v67_v13  ;;  %v43_v19 = vsel %vm42_vm0, %v41_v17, %v40_v16 }
  0x10   :  { %72 = vrot.lane.b32.xlu1 %v71_v15, %s93_s22  ;;  %45 = vst.msk [vmem:[%s147_s1] sm:$0xff] %vm44_vm1, %v43_v19  }
  0x13   :  { %62 = vrot.lane.b32.xlu0 %v61_v18, %s94_s25 }
  0x81   :  { %v53_v20 = vpop.permute.xlu0 %52  }
  0x82   :  { %55 = vst.msk [vmem:[%s147_s1] sm:$0xff] %vm54_vm2, %v53_v20   ;;  %v73_v21 = vpop.permute.xlu1 %72  }
  0x85   :  { %v63_v22 = vpop.permute.xlu0 %62  }
  0x86   :  { %65 = vst.msk [vmem:[%s147_s1] sm:$0xff] %vm64_vm3, %v63_v22  }
  0x87   :  { %75 = vst.msk [vmem:[%s147_s1] sm:$0xff] %vm74_vm4, %v73_v21  }

// kernel: mhmoe_forward.1
= control target key start
LH: loop header
LB: loop body
LE: loop exit
PB: predicated region body
PF: predicated region fallthrough
CT: control target
= control target key end

     0   :  { %s1883_s21 = smov 0   ;;  %s2208_s0 = inlined_call_operand.vmem [shape: f32[16,32], index: 0, kind: input, shape index: {}]   ;;  %s2209_s1 = inlined_call_operand.vmem [shape: f32[32,32], index: 1, kind: input, shape index: {}]   ;;  %s2210_s2 = inlined_call_operand.vmem [shape: f32[1,32], index: 2, kind: input, shape index: {}]   ;;  %s2211_s3 = inlined_call_operand.vmem [shape: f32[32,272], index: 3, kind: input, shape index: {}]   ;;  %s2212_s4 = inlined_call_operand.vmem [shape: f32[1,272], index: 4, kind: input, shape index: {}]   ;;  %s2213_s5 = inlined_call_operand.vmem [shape: s32[1,16], index: 5, kind: input, shape index: {}]   ;;  %s2214_s6 = inlined_call_operand.vmem [shape: f32[16,16], index: 6, kind: input, shape index: {}]   ;;  %s2215_s7 = inlined_call_operand.vmem [shape: f32[16,256], index: 7, kind: input, shape index: {}]   ;;  %s2216_s8 = inlined_call_operand.vmem [shape: f32[256,32], index: 8, kind: input, shape index: {}]   ;;  %s2217_s9 = inlined_call_operand.vmem [shape: f32[16,32], index: 9, kind: input, shape index: {}]   ;;  %s2218_s10 = inlined_call_operand.vmem [shape: f32[32,128], index: 10, kind: input, shape index: {}]   ;;  %s2219_s11 = inlined_call_operand.vmem [shape: f32[1,128], index: 11, kind: input, shape index: {}]   ;;  %s2220_s12 = inlined_call_operand.vmem [shape: f32[16,128], index: 12, kind: output, shape index: {}]  }
   0x1 LB: > { %s1541_s22 = sadd.s32 4294967295, %s1812_s21   ;;  %p1545_p0 = scmp.ge.s32.totalorder %s1812_s21, 1  ;;  %s1812_s21 = sphi %s1883_s21, %s22_s21  }
   0x2   : > { %p361_p1 = scmp.lt.s32.totalorder %s1812_s21, 3 }
   0x4   : > { %p362_p2 = pnand %p1545_p0, %p361_p1 }
   0x5   : > { %v410_v0 = vld [vmem:[%s2209_s1] sm:$0xff] (!%p362_p2)  ;;  %v411_v1 = vld [vmem:[%s2209_s1 + $0x8] sm:$0xff] (!%p362_p2)  ;;  %v412_v2 = vld [vmem:[%s2209_s1 + $0x10] sm:$0xff] (!%p362_p2)  ;;  %v1814_v3 = vmov (!%p362_p2), 0.0|0.0   ;;  %vm1815_vm0 = vmmov (!%p362_p2), 0   ;;  %v1816_v6 = vmov (!%p362_p2), 0.0   ;;  %v509_v31 = vlaneseq (!%p362_p2) }
   0x6   : > { %365 = sbr.rel (%p362_p2) target bundleno = 1489 (0x5d1), region = 68  ;;  %1706 = vmatprep.subr.bf16.mxu0 (!%p362_p2), %v1814_v3  ;;  %v1707_v4 = vpack.c.bf16 (!%p362_p2), %v411_v1, %v410_v0  ;;  %v413_v5 = vld [vmem:[%s2209_s1 + $0x18] sm:$0xff] (!%p362_p2)  ;;  %1639 = vmatprep.mubr.msk.f32.mxu0 (!%p362_p2), %vm1815_vm0, %v1816_v6  ;;  %p401_p3 = scmp.lt.s32.totalorder (!%p362_p2), %s1541_s22, 1  ;;  %v496_v7 = vld [vmem:[%s2211_s3 + $0x8] sm:$0xff] (!%p362_p2)  ;;  %v499_v8 = vld [vmem:[%s2211_s3 + $0x20] sm:$0xff] (!%p362_p2)  ;;  %vm2221_vm1 = vcmask (!%p362_p2), 261120  }
   0x7   : > { %1726 = vmatprep.subr.bf16.mxu1 (!%p362_p2), %v1814_v3  ;;  %1657 = vmatprep.mubr.msk.f32.mxu1 (!%p362_p2), %vm1815_vm0, %v1816_v6  ;;  %v1710_v9 = vpack.c.bf16 (!%p362_p2), %v413_v5, %v412_v2  ;;  %v1712_v10 = vpack.c.bf16 (!%p362_p2), %v499_v8, %v496_v7  ;;  %v495_v11 = vld [vmem:[%s2211_s3] sm:$0xff] (!%p362_p2)  ;;  %v498_v12 = vld [vmem:[%s2211_s3 + $0x18] sm:$0xff] (!%p362_p2)  ;;  %v505_v14 = vld [vmem:[%s2211_s3 + $0x50] sm:$0xff] (!%p362_p2)  ;;  %v1968_v32 = vshrl.u32 (!%p362_p2), %v509_v31, 7  ;;  %vm686_vm2 = vcmask (!%p362_p2), 130048  }
   0x8   : > { %1708 = vmatpush3.bf16.msra.mxu0 (!%p362_p2), %v1707_v4  ;;  %v502_v13 = vld [vmem:[%s2211_s3 + $0x38] sm:$0xff] (!%p362_p2)  ;;  %v1714_v16 = vpack.c.bf16 (!%p362_p2), %v498_v12, %v495_v11  ;;  %v501_v18 = vld [vmem:[%s2211_s3 + $0x30] sm:$0xff] (!%p362_p2)  ;;  %v504_v19 = vld [vmem:[%s2211_s3 + $0x48] sm:$0xff] (!%p362_p2)  ;;  %v1817_v49 = vmov (!%p362_p2), 0  }
   0x9   : > { %1709 = vmatprep.subr.bf16.mxu0 (!%p362_p2), %v1814_v3  ;;  %v1716_v17 = vpack.c.bf16 (!%p362_p2), %v505_v14, %v502_v13  ;;  %v1718_v20 = vpack.c.bf16 (!%p362_p2), %v504_v19, %v501_v18  ;;  %v497_v21 = vld [vmem:[%s2211_s3 + $0x10] sm:$0xff] (!%p362_p2)  ;;  %v500_v22 = vld [vmem:[%s2211_s3 + $0x28] sm:$0xff] (!%p362_p2)  ;;  %v1548_v23 = vld [vmem:[%s2210_s2] ss:$0 sm:$0xff] (!%p362_p2)  ;;  %v519_v35 = vsub.s32 (!%p362_p2), 2, %v1968_v32  ;;  %v1999_v51 = vsub.s32 (!%p362_p2), 0, %v1968_v32 }
   0xa   : > { %v1721_v25 = vpack.c.bf16 (!%p362_p2), %v500_v22, %v497_v21  ;;  %v503_v28 = vld [vmem:[%s2211_s3 + $0x40] sm:$0xff] (!%p362_p2)  ;;  %v506_v29 = vld [vmem:[%s2211_s3 + $0x58] sm:$0xff] (!%p362_p2)  ;;  %v694_v43 = vld [vmem:[%s2214_s6 + $0x8] sm:$0xff] (!%p362_p2) }
   0xb   : > { %v1724_v30 = vpack.c.bf16 (!%p362_p2), %v506_v29, %v503_v28  ;;  %v1978_v36 = vld [vmem:[%s2212_s4] sm:$0x7] (!%p362_p2)  ;;  %v1150_v0 = vld [vmem:[%s2215_s7 + $0x8] sm:$0xff] (!%p362_p2)  ;;  %v1152_v1 = vld [vmem:[%s2215_s7 + $0x18] sm:$0xff] (!%p362_p2) }
   0xc   : > { %1711 = vmatpush3.bf16.msra.mxu0 (!%p362_p2), %v1710_v9  ;;  %v520_v37 = vrot.slane (!%p362_p2), %v1978_v36, %v519_v35  ;;  %v693_v42 = vld [vmem:[%s2214_s6] sm:$0xff] (!%p362_p2)  ;;  %v1741_v2 = vpack.c.bf16 (!%p362_p2), %v1152_v1, %v1150_v0  ;;  %v1151_v5 = vld [vmem:[%s2215_s7 + $0x10] sm:$0xff] (!%p362_p2)  ;;  %v1262_v9 = vld [vmem:[%s2217_s9 + $0x8] sm:$0xff] (!%p362_p2) }
   0xd   : > { %s2224_s22 = smov (!%p401_p3, %s1541_s22), 1  ;;  %1713 = vmatprep.subr.bf16.mxu0 %v1712_v10  ;;  %v1727_v44 = vpack.c.bf16 %v694_v43, %v693_v42  ;;  %v1993_v46 = vld [vmem:[%s2213_s5] sm:$0x1]  ;;  %v1246_v12 = vld [vmem:[%s2216_s8 + $0x88] sm:$0xff]  ;;  %v1235_v0 = vld [vmem:[%s2216_s8 + $0x30] sm:$0xff] }
   0xe   : > { %s1546_s23 = sshll.u32 %s2224_s22, 3  ;;  %vm865_vm3 = vcmp.eq.s32.totalorder %v1993_v46, 1  ;;  %vm771_vm4 = vcmp.eq.s32.totalorder %v1993_v46, 0  ;;  %vm1053_vm5 = vcmp.eq.s32.totalorder %v1993_v46, 3  ;;  %vm959_vm6 = vcmp.eq.s32.totalorder %v1993_v46, 2  ;;  %v1149_v4 = vld [vmem:[%s2215_s7] sm:$0xff] }
   0xf   : > { %s404_s30 = scalar_lea.vmem %s2208_s0, %s1546_s23  ;;  %1728 = vmatpush3.bf16.msra.mxu1 %v1727_v44  ;;  %v866_v50 = vsel %vm865_vm3, 1, %v1817_v49  ;;  %v772_v53 = vsel %vm771_vm4, 1, %v1817_v49  ;;  %v1054_v54 = vsel %vm1053_vm5, 1, %v1817_v49  ;;  %v960_v57 = vsel %vm959_vm6, 1, %v1817_v49  ;;  %v1261_v7 = vld [vmem:[%s2217_s9] sm:$0xff]  ;;  %v1230_v43 = vld [vmem:[%s2216_s8 + $0x8] sm:$0xff]  ;;  %s408_s18 = scalar_lea.vmem %s2220_s12, %s1546_s23 }
  0x10   : > { %v409_v15 = vld [vmem:[%s404_s30] sm:$0xff]  ;;  %1729 = vmatprep.subr.bf16.mxu1 %v1814_v3  ;;  %v870_v52 = vrot.slane %v866_v50, %v1999_v51  ;;  %v776_v55 = vrot.slane %v772_v53, %v1999_v51  ;;  %v1058_v56 = vrot.slane %v1054_v54, %v1999_v51  ;;  %v964_v60 = vrot.slane %v960_v57, %v1999_v51  ;;  %v1232_v53 = vld [vmem:[%s2216_s8 + $0x18] sm:$0xff] }
  0x11   : > { %1640 = vmatmul.mubr.msk.f32.vlgmr.msra.gmra.mrb[0].mxu0 %vm2221_vm1, %v409_v15  ;;  %v1743_v8 = vpack.c.bf16 %v1151_v5, %v1149_v4  ;;  %v1746_v10 = vpack.c.bf16 %v1262_v9, %v1261_v7  ;;  %v1245_v11 = vld [vmem:[%s2216_s8 + $0x80] sm:$0xff]  ;;  %vm948_vm11 = vcmp.gt.s32.totalorder %v1993_v46, 1  ;;  %vm854_vm12 = vcmp.gt.s32.totalorder %v1993_v46, 0  ;;  %v1236_v1 = vld [vmem:[%s2216_s8 + $0x38] sm:$0xff]  ;;  %v1254_v4 = vld [vmem:[%s2216_s8 + $0xc8] sm:$0xff] }
  0x12   : > { %1715 = vmatpush1.bf16.msra.mxu0 %v1714_v16  ;;  %591 = vmatprep.mubr.f32.mxu0 %v1816_v6  ;;  %vm871_vm7 = vcmp.eq.s32.totalorder %v870_v52, 1  ;;  %vm777_vm8 = vcmp.eq.s32.totalorder %v776_v55, 1  ;;  %vm1059_vm9 = vcmp.eq.s32.totalorder %v1058_v56, 1  ;;  %vm965_vm10 = vcmp.eq.s32.totalorder %v964_v60, 1  ;;  %v1229_v42 = vld [vmem:[%s2216_s8] sm:$0xff]  ;;  %v1231_v52 = vld [vmem:[%s2216_s8 + $0x10] sm:$0xff] }
  0x13   : > { %1717 = vmatprep.subr.bf16.mxu0 %v1716_v17  ;;  %v1748_v13 = vpack.c.bf16 %v1246_v12, %v1245_v11  ;;  %v949_v14 = vsel %vm948_vm11, 1, %v1817_v49  ;;  %vm1136_vm13 = vcmp.gt.s32.totalorder %v1993_v46, 3  ;;  %v855_v16 = vsel %vm854_vm12, 1, %v1817_v49  ;;  %v1249_v55 = vld [vmem:[%s2216_s8 + $0xa0] sm:$0xff]  ;;  %v1250_v56 = vld [vmem:[%s2216_s8 + $0xa8] sm:$0xff]  ;;  %v1256_v11 = vld [vmem:[%s2216_s8 + $0xd8] sm:$0xff] }
  0x14   : > { %v953_v15 = vrot.slane %v949_v14, %v1999_v51  ;;  %vm1042_vm14 = vcmp.gt.s32.totalorder %v1993_v46, 2  ;;  %v1137_v17 = vsel %vm1136_vm13, 1, %v1817_v49  ;;  %v859_v18 = vrot.slane %v855_v16, %v1999_v51  ;;  %v1248_v46 = vld [vmem:[%s2216_s8 + $0x98] sm:$0xff]  ;;  %v1234_v60 = vld [vmem:[%s2216_s8 + $0x28] sm:$0xff]  ;;  %v1239_v14 = vld [vmem:[%s2216_s8 + $0x50] sm:$0xff] }
  0x15   : > { %v1754_v57 = vpack.c.bf16 %v1232_v53, %v1231_v52  ;;  %v1762_v5 = vpack.c.bf16 %v1236_v1, %v1235_v0  ;;  %v1238_v9 = vld [vmem:[%s2216_s8 + $0x48] sm:$0xff]  ;;  %v1257_v16 = vld [vmem:[%s2216_s8 + $0xe0] sm:$0xff] }
  0x16   : > { %1719 = vmatpush1.bf16.msra.mxu0 %v1718_v20  ;;  %vm954_vm15 = vcmp.eq.s32.totalorder %v953_v15, 1  ;;  %v1043_v20 = vsel %vm1042_vm14, 1, %v1817_v49  ;;  %vm860_vm6 = vcmp.eq.s32.totalorder %v859_v18, 1  ;;  %v1750_v49 = vpack.c.bf16 %v1230_v43, %v1229_v42  ;;  %v1240_v15 = vld [vmem:[%s2216_s8 + $0x58] sm:$0xff] }
  0x17   : > { %1720 = vmatprep.subr.bf16.mxu0 %v1814_v3  ;;  %v1770_v18 = vpack.c.bf16 %v1240_v15, %v1239_v14 }
  0xe4   : > { %v491_v24 = vpop.f32.mrb[0].mxu0 }
  0xe5   : > { %v492_v26 = vadd.f32 %v1548_v23, %v491_v24  ;;  %v1641_v27 = vpop.f32.mrb[1].mxu0  ;;  %v1141_v23 = vrot.slane %v1137_v17, %v1999_v51  ;;  %v1258_v17 = vld [vmem:[%s2216_s8 + $0xe8] sm:$0xff] }
  0xe7   : > { %1550 = vmatmul.mubr.msk.f32.vlgmr.msra.gmra.mrb[2].mxu0 %vm2221_vm1, %v492_v26 }
  0xe8   : > { %1722 = vmatpush3.bf16.msra.mxu0 %v1721_v25  ;;  %1650 = vmatprep.mubr.msk.f32.mxu0 %vm1815_vm0, %v1816_v6  ;;  %v1047_v25 = vrot.slane %v1043_v20, %v1999_v51  ;;  %v1241_v20 = vld [vmem:[%s2216_s8 + $0x60] sm:$0xff] }
  0xe9   : > { %1723 = vmatprep.subr.bf16.mxu0 %v1814_v3 }
  0xec   : > { %1725 = vmatpush3.bf16.msra.mxu0 %v1724_v30 }
  0xed   : > { %1732 = vmatprep.subr.bf16.mxu0 %v1814_v3 }
  0xef   : > { %1651 = vmatmul.mubr.msk.f32.vlgmr.msra.gmra.mrb[4].mxu0 %vm2221_vm1, %v492_v26 }
  0xf0   : > { %1671 = vmatprep.mubr.msk.f32.mxu0 %vm1815_vm0, %v1816_v6  ;;  %1734 = vmatpush3.bf16.msra.mxu0 %v1727_v44 }
  0xf1   : > { %1738 = vmatprep.subr.bf16.mxu0 %v1814_v3 }
 0x1ba   : > { %v1970_v33 = vpop.f32.mrb[2].mxu0 }
 0x1bb   : > { %v1972_v34 = vpop.f32.mrb[3].mxu0 }
 0x1c2   : > { %v664_v38 = vpop.f32.mrb[4].mxu0 }
 0x1c3   : > { %v665_v39 = vadd.f32 %v664_v38, %v520_v37  ;;  %v1652_v40 = vpop.f32.mrb[5].mxu0 }
 0x1c5   : > { %v687_v41 = vsel %vm686_vm2, %v665_v39, -inf }
 0x1c6   : > { %688 = vmax.xlane.f32.xlu0 %v687_v41 }
 0x253   : > { %v689_v45 = vpop.xlane.xlu0 %688 }
 0x254   : > { %v690_v47 = vsub.f32 %v665_v39, %v689_v45  ;;  %v1247_v45 = vld [vmem:[%s2216_s8 + $0x90] sm:$0xff] }
 0x255   : > { %v1752_v50 = vpack.c.bf16 %v1248_v46, %v1247_v45 }
 0x256   : > { %v691_v48 = vmul.f32 1.442695, %v690_v47 }
 0x258   : > { %1798 = vpow2.f32 %v691_v48 }
 0x262   : > { %v2009_v58 = vpop.eup %1798 }
 0x263   : > { %1658 = vmatmul.mubr.msk.f32.vlgmr.msra.gmra.mrb[0].mxu1 %vm686_vm2, %v2009_v58  ;;  %v872_v59 = vsel %vm871_vm7, %v2009_v58, 0.0  ;;  %v778_v61 = vsel %vm777_vm8, %v2009_v58, 0.0  ;;  %v1060_v62 = vsel %vm1059_vm9, %v2009_v58, 0.0  ;;  %v966_v63 = vsel %vm965_vm10, %v2009_v58, 0.0 }
 0x264   : > { %1731 = vmatpush3.bf16.msra.mxu1 %v1727_v44  ;;  %1672 = vmatmul.mubr.msk.f32.vlgmr.msra.gmra.mrb[6].mxu0 %vm686_vm2, %v872_v59  ;;  %vm1142_vm10 = vcmp.eq.s32.totalorder %v1141_v23, 1  ;;  %v1233_v59 = vld [vmem:[%s2216_s8 + $0x20] sm:$0xff]  ;;  %v1259_v23 = vld [vmem:[%s2216_s8 + $0xf0] sm:$0xff] }
 0x265   : > { %1740 = vmatpush3.bf16.msra.mxu0 %v1727_v44  ;;  %1664 = vmatprep.mubr.msk.f32.mxu1 %vm1815_vm0, %v1816_v6 }
 0x266   : > { %1735 = vmatprep.subr.bf16.mxu1 %v1814_v3  ;;  %1685 = vmatprep.mubr.msk.f32.mxu0 %vm1815_vm0, %v1816_v6 }
 0x267   : > { %1665 = vmatmul.mubr.msk.f32.vlgmr.msra.gmra.mrb[2].mxu1 %vm686_vm2, %v778_v61  ;;  %1745 = vmatprep.subr.bf16.mxu0 %v1814_v3  ;;  %v1251_v61 = vld [vmem:[%s2216_s8 + $0xb0] sm:$0xff] }
 0x268   : > { %1737 = vmatpush3.bf16.msra.mxu1 %v1727_v44  ;;  %1686 = vmatmul.mubr.msk.f32.vlgmr.msra.gmra.mrb[8].mxu0 %vm686_vm2, %v1060_v62  ;;  %v1252_v62 = vld [vmem:[%s2216_s8 + $0xb8] sm:$0xff] }
 0x269   : > { %1678 = vmatprep.mubr.msk.f32.mxu1 %vm1815_vm0, %v1816_v6  ;;  %1692 = vmatprep.mubr.msk.f32.mxu0 %vm1815_vm0, %v1816_v6 }
 0x26a   : > { %1742 = vmatprep.subr.bf16.mxu1 %v1741_v2  ;;  %1747 = vmatpush3.bf16.msra.mxu0 %v1746_v10  ;;  %v1253_v2 = vld [vmem:[%s2216_s8 + $0xc0] sm:$0xff]  ;;  %v1255_v10 = vld [vmem:[%s2216_s8 + $0xd0] sm:$0xff] }
 0x26b   : > { %1679 = vmatmul.mubr.msk.f32.vlgmr.msra.gmra.mrb[4].mxu1 %vm686_vm2, %v966_v63  ;;  %1780 = vmatprep.subr.bf16.mxu0 %v1814_v3  ;;  %v1760_v63 = vpack.c.bf16 %v1252_v62, %v1251_v61  ;;  %v1764_v7 = vpack.c.bf16 %v1254_v4, %v1253_v2  ;;  %v1406_v61 = vld [vmem:[%s2218_s10 + $0x18] sm:$0xff]  ;;  %v1559_v2 = vld [vmem:[%s2219_s11] ss:$0 sm:$0xff] }
 0x26c   : > { %1220 = vmatprep.mubr.f32.mxu1 %v1816_v6  ;;  %1744 = vmatpush1.bf16.msra.mxu1 %v1743_v8  ;;  %v1237_v8 = vld [vmem:[%s2216_s8 + $0x40] sm:$0xff] }
 0x26d   : > { %1749 = vmatprep.subr.bf16.mxu1 %v1748_v13  ;;  %v1766_v12 = vpack.c.bf16 %v1238_v9, %v1237_v8  ;;  %v1768_v13 = vpack.c.bf16 %v1256_v11, %v1255_v10 }
 0x336   : > { %v764_v19 = vpop.f32.mrb[0].mxu1 }
 0x337   : > { %v1659_v21 = vpop.f32.mrb[1].mxu1  ;;  %v942_v22 = vpop.f32.mrb[6].mxu0  ;;  %1800 = vrcp.f32 %v764_v19  ;;  %v1772_v19 = vpack.c.bf16 %v1258_v17, %v1257_v16 }
 0x338   : > { %vm946_vm3 = vcmp.gt.f32.partialorder %v942_v22, %v2009_v58  ;;  %vm947_vm4 = vcmp.eq.f32.partialorder %v942_v22, %v2009_v58  ;;  %v1673_v24 = vpop.f32.mrb[7].mxu0  ;;  %v1242_v21 = vld [vmem:[%s2216_s8 + $0x68] sm:$0xff] }
 0x339   : > { %vm955_vm5 = vmand %vm947_vm4, %vm954_vm15  ;;  %vm1048_vm15 = vcmp.eq.s32.totalorder %v1047_v25, 1  ;;  %v1774_v22 = vpack.c.bf16 %v1242_v21, %v1241_v20  ;;  %v1260_v24 = vld [vmem:[%s2216_s8 + $0xf8] sm:$0xff] }
 0x33a   : > { %v848_v26 = vpop.f32.mrb[2].mxu1  ;;  %vm956_vm7 = vmor %vm946_vm3, %vm955_vm5  ;;  %v1776_v25 = vpack.c.bf16 %v1260_v24, %v1259_v23 }
 0x33b   : > { %vm852_vm8 = vcmp.gt.f32.partialorder %v848_v26, %v2009_v58  ;;  %vm853_vm9 = vcmp.eq.f32.partialorder %v848_v26, %v2009_v58  ;;  %v1666_v27 = vpop.f32.mrb[3].mxu1  ;;  %v1130_v28 = vpop.f32.mrb[8].mxu0  ;;  %v957_v30 = vsel %vm956_vm7, 1.0, %v1816_v6  ;;  %v1243_v26 = vld [vmem:[%s2216_s8 + $0x70] sm:$0xff] }
 0x33c   : > { %vm861_vm11 = vmand %vm853_vm9, %vm860_vm6  ;;  %vm1134_vm12 = vcmp.gt.f32.partialorder %v1130_v28, %v2009_v58  ;;  %vm1135_vm13 = vcmp.eq.f32.partialorder %v1130_v28, %v2009_v58  ;;  %v1687_v29 = vpop.f32.mrb[9].mxu0  ;;  %v1244_v27 = vld [vmem:[%s2216_s8 + $0x78] sm:$0xff] }
 0x33d   : > { %vm862_vm14 = vmor %vm852_vm8, %vm861_vm11  ;;  %v1778_v28 = vpack.c.bf16 %v1244_v27, %v1243_v26  ;;  %v1403_v29 = vld [vmem:[%s2218_s10] sm:$0xff] }
 0x33e   : > { %v863_v31 = vsel %vm862_vm14, 1.0, %v1816_v6  ;;  %vm1143_vm3 = vmand %vm1135_vm13, %vm1142_vm10  ;;  %v1036_v35 = vpop.f32.mrb[4].mxu1 }
 0x33f   : > { %v958_v37 = vadd.f32 %v957_v30, %v863_v31  ;;  %vm1144_vm4 = vmor %vm1134_vm12, %vm1143_vm3  ;;  %vm1040_vm5 = vcmp.gt.f32.partialorder %v1036_v35, %v2009_v58  ;;  %vm1041_vm1 = vcmp.eq.f32.partialorder %v1036_v35, %v2009_v58  ;;  %v1680_v38 = vpop.f32.mrb[5].mxu1  ;;  %v1404_v30 = vld [vmem:[%s2218_s10 + $0x8] sm:$0xff]  ;;  %v515_v35 = vsub.s32 1, %v1968_v32 }
 0x340   : > { %vm1049_vm6 = vmand %vm1041_vm1, %vm1048_vm15  ;;  %v1145_v44 = vsel %vm1144_vm4, 1.0, %v1816_v6  ;;  %v1781_v31 = vpack.c.bf16 %v1404_v30, %v1403_v29 }
 0x341   : > { %vm1050_vm9 = vmor %vm1040_vm5, %vm1049_vm6  ;;  %v1801_v40 = vpop.eup %1800  ;;  %v516_v38 = vrot.slane %v1978_v36, %v515_v35 }
 0x342   : > { %v1051_v39 = vsel %vm1050_vm9, 1.0, %v1816_v6  ;;  %v769_v48 = vmul.f32 %v1801_v40, %v2009_v58  ;;  %v1756_v58 = vpack.c.bf16 %v1250_v56, %v1249_v55 }
 0x343   : > { %v1052_v41 = vadd.f32 %v1051_v39, %v958_v37  ;;  %v512_v37 = vrot.slane %v1978_v36, %v1999_v51  ;;  %v596_v40 = vadd.f32 %v1972_v34, %v516_v38 }
 0x345   : > { %v1146_v47 = vadd.f32 %v1145_v44, %v1052_v41  ;;  %v594_v39 = vadd.f32 %v1970_v33, %v512_v37  ;;  %v671_v42 = vmul.f32 0.044715, %v596_v40  ;;  %v669_v33 = vmul.f32 0.5, %v596_v40 }
 0x347   : > { %vm1147_vm1 = vcmp.lt.f32.partialorder %v1146_v47, 2.0  ;;  %v670_v41 = vmul.f32 0.044715, %v594_v39  ;;  %v673_v44 = vmul.f32 %v671_v42, %v596_v40  ;;  %v668_v52 = vmul.f32 0.5, %v594_v39 }
 0x348   : > { %v1148_v54 = vsel %vm1147_vm1, %v769_v48, 0.0 }
 0x349   : > { %1557 = vmatmul.mubr.msk.f32.vlgmr.msra.gmra.mrb[6].mxu1 %vm686_vm2, %v1148_v54  ;;  %1693 = vmatmul.mubr.msk.f32.vlgmr.msra.gmra.mrb[10].mxu0 %vm686_vm2, %v1148_v54  ;;  %v672_v43 = vmul.f32 %v670_v41, %v594_v39  ;;  %v675_v46 = vmul.f32 %v673_v44, %v596_v40 }
 0x34a   : > { %1751 = vmatpush3.bf16.msra.mxu1 %v1750_v49  ;;  %1703 = vmatprep.mubr.msk.f32.mxu0 %vm1815_vm0, %v1816_v6  ;;  %v1758_v6 = vpack.c.bf16 %v1234_v60, %v1233_v59  ;;  %v1405_v60 = vld [vmem:[%s2218_s10 + $0x10] sm:$0xff]  ;;  %vm2222_vm0 = vcmask 261120  }
 0x34b   : > { %1753 = vmatprep.subr.bf16.mxu1 %v1752_v50  ;;  %1782 = vmatpush3.bf16.msra.mxu0 %v1781_v31  ;;  %v674_v45 = vmul.f32 %v672_v43, %v594_v39  ;;  %v677_v48 = vadd.f32 %v675_v46, %v596_v40  ;;  %v1784_v62 = vpack.c.bf16 %v1406_v61, %v1405_v60 }
 0x34c   : > { %1783 = vmatprep.subr.bf16.mxu0 %v1814_v3 }
 0x34d   : > { %v676_v47 = vadd.f32 %v674_v45, %v594_v39  ;;  %v679_v49 = vmul.f32 0.7978846, %v677_v48 }
 0x34e   : > { %1755 = vmatpush3.bf16.msra.mxu1 %v1754_v57 }
 0x34f   : > { %1757 = vmatprep.subr.bf16.mxu1 %v1756_v58  ;;  %v678_v3 = vmul.f32 0.7978846, %v676_v47  ;;  %1785 = vmatpush3.bf16.msra.mxu0 %v1784_v62 }
 0x351   : > { %1802 = vtanh.f32 %v678_v3 }
 0x352   : > { %1759 = vmatpush3.bf16.msra.mxu1 %v1758_v6  ;;  %1804 = vtanh.f32 %v679_v49 }
 0x353   : > { %1761 = vmatprep.subr.bf16.mxu1 %v1760_v63 }
 0x356   : > { %1763 = vmatpush3.bf16.msra.mxu1 %v1762_v5 }
 0x357   : > { %1765 = vmatprep.subr.bf16.mxu1 %v1764_v7 }
 0x35a   : > { %1767 = vmatpush3.bf16.msra.mxu1 %v1766_v12 }
 0x35b   : > { %1769 = vmatprep.subr.bf16.mxu1 %v1768_v13  ;;  %v1803_v32 = vpop.eup %1802 }
 0x35c   : > { %v1805_v51 = vpop.eup %1804  ;;  %v682_v50 = vadd.f32 1.0, %v1803_v32 }
 0x35d   : > { %v683_v36 = vadd.f32 1.0, %v1805_v51 }
 0x35e   : > { %1771 = vmatpush3.bf16.msra.mxu1 %v1770_v18  ;;  %v684_v53 = vmul.f32 %v682_v50, %v668_v52 }
 0x35f   : > { %1773 = vmatprep.subr.bf16.mxu1 %v1772_v19  ;;  %v685_v55 = vmul.f32 %v683_v36, %v669_v33 }
 0x362   : > { %1775 = vmatpush3.bf16.msra.mxu1 %v1774_v22 }
 0x363   : > { %1777 = vmatprep.subr.bf16.mxu1 %v1776_v25 }
 0x366   : > { %1779 = vmatpush3.bf16.msra.mxu1 %v1778_v28 }
 0x41c   : > { %v1222_v34 = vpop.f32.mrb[6].mxu1  ;;  %v1329_v54 = vpop.f32.mrb[10].mxu0 }
 0x41d   : > { %v1227_v56 = vmul.f32 %v1222_v34, %v684_v53  ;;  %v1224_v57 = vpop.f32.mrb[7].mxu1  ;;  %v1694_v58 = vpop.f32.mrb[11].mxu0 }
 0x41e   : > { %v1228_v59 = vmul.f32 %v1224_v57, %v685_v55 }
 0x420   : > { %1397 = vmatprep.mubr.f32.mxu1 %v1228_v59 }
 0x421   : > { %1398 = vmatmul.mubr.f32.vlgmr.msra.gmra.mrb[8].mxu1 %v1227_v56 }
 0x4f4   : > { %v1623_v6 = vpop.f32.mrb[8].mxu1 }
 0x4f5   : > { %v1624_v63 = vpop.f32.mrb[9].mxu1 }
 0x4f6   : > { %v1625_v0 = vadd.f32 %v1624_v63, %v1623_v6 }
 0x4f8   : > { %v1400_v1 = vadd.f32 %v1625_v0, %v1329_v54 }
 0x4fa   : > { %1704 = vmatmul.mubr.msk.f32.vlgmr.msra.gmra.mrb[12].mxu0 %vm2222_vm0, %v1400_v1 }
 0x5cd   : > { %v1483_v4 = vpop.f32.mrb[12].mxu0 }
 0x5ce   : > { %v1484_v5 = vadd.f32 %v1559_v2, %v1483_v4  ;;  %v1705_v7 = vpop.f32.mrb[13].mxu0 }
 0x5d0   : > { %1487 = vst [vmem:[%s408_s18] sm:$0xff] %v1484_v5 }
 0x5d1 PF: > { %s22_s21 = sadd.s32 1, %s1812_s21  }
 0x5d2   : > { %p19_p4 = scmp.ge.s32.totalorder %s22_s21, 4  }
 0x5d4   :  { %21 = sbr.rel (!%p19_p4) target bundleno = 1 (0x1), region = 98 }

</bundles_post_ra>
